<compile_context>
chip_gen: v7x
topology: tpu7x:2x2x1
jax: 0.10.0
libtpu: 0.0.40
codegen_flags: <defaults>
</compile_context>

<pallas_src>
import jax
import jax.numpy as jnp
from jax.experimental import pallas as pl
from jax.experimental.pallas import tpu as pltpu


def _round_up(n, m):
    return pl.cdiv(n, m) * m


def _mlp_kernel(xt_ref, w1t_ref, b1_ref, w2t_ref, b2_ref, w3t_ref, b3_ref, o_ref):
    # Batch-in-lanes dataflow: every activation tile is lane-dense (bn lanes).
    xt = xt_ref[...]                                             # (D, bn) bf16

    # Layer 1: (32, D) @ (D, bn) -> (32, bn), f32 accumulation on the MXU.
    h1 = jnp.dot(w1t_ref[...], xt, preferred_element_type=jnp.float32)
    h1 = jnp.maximum(h1 + b1_ref[...], 0.0)                      # (32, bn) f32

    # Layer 2: (16, 32) @ (32, bn) -> (16, bn).  K is tiny; stay in f32
    # (no full-tile cast pass, MXU throughput irrelevant at this size).
    h2 = jnp.dot(w2t_ref[...], h1, preferred_element_type=jnp.float32)
    h2 = jnp.maximum(h2 + b2_ref[...], 0.0)                      # (16, bn) f32

    # Head: (1, 16) @ (16, bn) -> (1, bn); plain matmul, lane-dense output.
    out = jnp.dot(w3t_ref[...], h2, preferred_element_type=jnp.float32)
    o_ref[...] = (out + b3_ref[...]).astype(o_ref.dtype)


def emission_model_forward(x, params, *, block_n=16384, compute_dtype=jnp.bfloat16):
    """x: (N, D) float32.  params: dict of w1,b1,w2,b2,w3,b3.  Returns (N, 1) f32."""
    N, D = x.shape
    cd_itemsize = jnp.dtype(compute_dtype).itemsize

    # One producer HBM pass: cast to bf16 + transpose to (D, N) (pad fuses in).
    xt = x.astype(compute_dtype).T                               # (D, N)

    # Weights in PyTorch "W" orientation (out, in) so the kernel computes W @ x_t.
    w1t = params["w1"].T.astype(compute_dtype)                   # (32, D)
    b1 = params["b1"].reshape(-1, 1).astype(jnp.float32)         # (32, 1)
    w2t = params["w2"].T.astype(jnp.float32)                     # (16, 32)
    b2 = params["b2"].reshape(-1, 1).astype(jnp.float32)         # (16, 1)
    w3t = params["w3"].T.astype(jnp.float32)                     # (1, 16)
    b3 = params["b3"].reshape(1, 1).astype(jnp.float32)          # (1, 1)

    # --- batch-tile selection (footprint-accurate, v7x-safe) ----------------
    # VMEM bytes per lane-column: double-buffered x / out blocks plus the f32
    # intermediates h1/h2 (all lane-dense in the transposed dataflow).
    bytes_per_col = (2 * _round_up(D, 16) * cd_itemsize          # x blocks, 2 bufs (bf16)
                     + 2 * 8 * 4                                 # out blocks: (1,bn) f32 pads to 8 sublanes
                     + 32 * 4 + 16 * 4)                          # h1, h2 intermediates (f32)
    budget = 40 * 1024 * 1024                                    # safe on v7x (64 MiB/TC)
    cap = max(256, (budget // bytes_per_col) // 256 * 256)

    # Guarantee >= 2 grid steps for moderate N so ("parallel",) splits across
    # both v7x TensorCores; large N already produces many steps.
    half_n = max(256, _round_up(pl.cdiv(N, 2), 256))
    bn = max(256, min(block_n, cap, half_n))

    N_pad = _round_up(N, bn)
    if N_pad != N:
        xt = jnp.pad(xt, ((0, 0), (0, N_pad - N)))
    grid = (N_pad // bn,)

    full = lambda s: pl.BlockSpec(s, lambda i: (0, 0))           # whole-array blocks

    flops = 2 * N_pad * (D * 32 + 32 * 16 + 16 * 1)
    bytes_accessed = (N_pad * D * cd_itemsize                    # x (bf16)
                      + N_pad * 4                                # out (f32)
                      + D * 32 * cd_itemsize                     # w1 (bf16)
                      + (32 * 16 + 16) * 4                       # w2, w3 (f32)
                      + (32 + 16 + 1) * 4)                       # biases (f32)
    cost = pl.CostEstimate(flops=flops, transcendentals=0,
                           bytes_accessed=bytes_accessed)

    footprint = bn * bytes_per_col + 2 * 1024 * 1024             # + weights/bias slack
    vmem_limit = int(min(48 * 1024 * 1024, max(footprint, 8 * 1024 * 1024)))

    out_t = pl.pallas_call(
        _mlp_kernel,
        out_shape=jax.ShapeDtypeStruct((1, N_pad), jnp.float32),  # lane-dense
        grid_spec=pltpu.PrefetchScalarGridSpec(
            num_scalar_prefetch=0,
            grid=grid,
            in_specs=[
                pl.BlockSpec((D, bn), lambda i: (0, i)),          # x tile (batch in lanes)
                full(w1t.shape), full(b1.shape),
                full(w2t.shape), full(b2.shape),
                full(w3t.shape), full(b3.shape),
            ],
            out_specs=pl.BlockSpec((1, bn), lambda i: (0, i)),
        ),
        compiler_params=pltpu.CompilerParams(
            dimension_semantics=("parallel",),
            vmem_limit_bytes=vmem_limit),
        cost_estimate=cost,
    )(xt, w1t, b1, w2t, b2, w3t, b3)

    # (1, N_pad) -> (N, 1)
    return out_t[:, :N].reshape(N, 1)


def init_params(key, input_dim):
    """Mirrors PyTorch nn.Linear default init: U[-1/sqrt(fan_in), +1/sqrt(fan_in)].
    Weights stored as (in, out) == PyTorch W.T; biases as (1, out)."""
    def linear(k, fan_in, fan_out):
        kw, kb = jax.random.split(k)
        bound = 1.0 / jnp.sqrt(float(fan_in))
        w = jax.random.uniform(kw, (fan_in, fan_out), jnp.float32, -bound, bound)
        b = jax.random.uniform(kb, (1, fan_out), jnp.float32, -bound, bound)
        return w, b

    k1, k2, k3 = jax.random.split(key, 3)
    w1, b1 = linear(k1, input_dim, 32)
    w2, b2 = linear(k2, 32, 16)
    w3, b3 = linear(k3, 16, 1)
    return {"w1": w1, "b1": b1, "w2": w2, "b2": b2, "w3": w3, "b3": b3}


def reference_forward(x, p, compute_dtype=jnp.bfloat16):
    """Precision-matched JAX reference (bf16 layer-1 operands, f32 everywhere else)."""
    h1 = jnp.dot(x.astype(compute_dtype), p["w1"].astype(compute_dtype),
                 preferred_element_type=jnp.float32) + p["b1"]
    h1 = jnp.maximum(h1, 0.0)
    h2 = jnp.dot(h1, p["w2"], preferred_element_type=jnp.float32,
                 precision=jax.lax.Precision.HIGHEST) + p["b2"]
    h2 = jnp.maximum(h2, 0.0)
    out = jnp.dot(h2, p["w3"], preferred_element_type=jnp.float32,
                  precision=jax.lax.Precision.HIGHEST) + p["b3"]
    return out


if __name__ == "__main__":
    key = jax.random.PRNGKey(0)
    k_param, k_x = jax.random.split(key)

    input_dim = 32
    batch = 128

    params = init_params(k_param, input_dim)
    x = jax.random.normal(k_x, (batch, input_dim), jnp.float32)

    out = jax.block_until_ready(emission_model_forward(x, params))
    assert out.shape == (batch, 1)
    ref = reference_forward(x, params)
    assert jnp.allclose(out, ref, atol=1e-2, rtol=1e-2), "mismatch vs reference"

    # Ragged batch: exercises the cdiv + padding path.
    x2 = jax.random.normal(jax.random.PRNGKey(1), (77, input_dim), jnp.float32)
    out2 = jax.block_until_ready(emission_model_forward(x2, params))
    ref2 = reference_forward(x2, params)
    assert out2.shape == (77, 1)
    assert jnp.allclose(out2, ref2, atol=1e-2, rtol=1e-2), "mismatch vs reference (ragged)"

    print("KERNEL_OK")
</pallas_src>

<mosaic_0001>
module attributes {stable_mosaic.version = 11 : i64} {
  func.func @_mlp_kernel(%arg0: i32, %arg1: memref<32x256xbf16, #tpu.memory_space<vmem>>, %arg2: memref<32x32xbf16, #tpu.memory_space<vmem>>, %arg3: memref<32x1xf32, #tpu.memory_space<vmem>>, %arg4: memref<16x32xf32, #tpu.memory_space<vmem>>, %arg5: memref<16x1xf32, #tpu.memory_space<vmem>>, %arg6: memref<1x16xf32, #tpu.memory_space<vmem>>, %arg7: memref<1x1xf32, #tpu.memory_space<vmem>>, %arg8: memref<1x256xf32, #tpu.memory_space<vmem>>) attributes {dimension_semantics = [#tpu.dimension_semantics<parallel>], iteration_bounds = array<i64: 1>, scalar_prefetch = 0 : i64, scratch_operands = 0 : i64, tpu.core_type = #tpu.core_type<tc>, window_params = [{transform_indices = @transform_0, window_bounds = array<i64: 32, 256>}, {pipeline_mode = #tpu.pipeline_mode<synchronous>, transform_indices = @transform_1, window_bounds = array<i64: 32, 32>}, {pipeline_mode = #tpu.pipeline_mode<synchronous>, transform_indices = @transform_2, window_bounds = array<i64: 32, 1>}, {pipeline_mode = #tpu.pipeline_mode<synchronous>, transform_indices = @transform_3, window_bounds = array<i64: 16, 32>}, {pipeline_mode = #tpu.pipeline_mode<synchronous>, transform_indices = @transform_4, window_bounds = array<i64: 16, 1>}, {pipeline_mode = #tpu.pipeline_mode<synchronous>, transform_indices = @transform_5, window_bounds = array<i64: 1, 16>}, {pipeline_mode = #tpu.pipeline_mode<synchronous>, transform_indices = @transform_6, window_bounds = array<i64: 1, 1>}, {transform_indices = @transform_7, window_bounds = array<i64: 1, 256>}]} {
    %c0 = arith.constant 0 : index
    %c0_0 = arith.constant 0 : index
    %0 = vector.load %arg1[%c0, %c0_0] : memref<32x256xbf16, #tpu.memory_space<vmem>>, vector<32x256xbf16>
    %c0_1 = arith.constant 0 : index
    %c0_2 = arith.constant 0 : index
    %1 = vector.load %arg2[%c0_1, %c0_2] : memref<32x32xbf16, #tpu.memory_space<vmem>>, vector<32x32xbf16>
    %cst = arith.constant dense<0.000000e+00> : vector<32x256xf32>
    %2 = tpu.matmul %1, %0, %cst {dimension_numbers = #tpu.dot_dimension_numbers<[1], [0], [0], [1], [0, 0, 1, 1], [], []>} : vector<32x32xbf16>, vector<32x256xbf16>, vector<32x256xf32> -> vector<32x256xf32>
    %c0_3 = arith.constant 0 : index
    %c0_4 = arith.constant 0 : index
    %3 = vector.load %arg3[%c0_3, %c0_4] : memref<32x1xf32, #tpu.memory_space<vmem>>, vector<32x1xf32>
    %4 = vector.broadcast %3 : vector<32x1xf32> to vector<32x256xf32>
    %5 = arith.addf %2, %4 : vector<32x256xf32>
    %cst_5 = arith.constant 0.000000e+00 : f32
    %6 = vector.broadcast %cst_5 : f32 to vector<32x256xf32>
    %7 = arith.maximumf %5, %6 : vector<32x256xf32>
    %c0_6 = arith.constant 0 : index
    %c0_7 = arith.constant 0 : index
    %8 = vector.load %arg4[%c0_6, %c0_7] : memref<16x32xf32, #tpu.memory_space<vmem>>, vector<16x32xf32>
    %cst_8 = arith.constant dense<0.000000e+00> : vector<16x256xf32>
    %9 = tpu.matmul %8, %7, %cst_8 {dimension_numbers = #tpu.dot_dimension_numbers<[1], [0], [0], [1], [0, 0, 1, 1], [], []>} : vector<16x32xf32>, vector<32x256xf32>, vector<16x256xf32> -> vector<16x256xf32>
    %c0_9 = arith.constant 0 : index
    %c0_10 = arith.constant 0 : index
    %10 = vector.load %arg5[%c0_9, %c0_10] : memref<16x1xf32, #tpu.memory_space<vmem>>, vector<16x1xf32>
    %11 = vector.broadcast %10 : vector<16x1xf32> to vector<16x256xf32>
    %12 = arith.addf %9, %11 : vector<16x256xf32>
    %cst_11 = arith.constant 0.000000e+00 : f32
    %13 = vector.broadcast %cst_11 : f32 to vector<16x256xf32>
    %14 = arith.maximumf %12, %13 : vector<16x256xf32>
    %c0_12 = arith.constant 0 : index
    %c0_13 = arith.constant 0 : index
    %15 = vector.load %arg6[%c0_12, %c0_13] : memref<1x16xf32, #tpu.memory_space<vmem>>, vector<1x16xf32>
    %cst_14 = arith.constant dense<0.000000e+00> : vector<1x256xf32>
    %16 = tpu.matmul %15, %14, %cst_14 {dimension_numbers = #tpu.dot_dimension_numbers<[1], [0], [0], [1], [0, 0, 1, 1], [], []>} : vector<1x16xf32>, vector<16x256xf32>, vector<1x256xf32> -> vector<1x256xf32>
    %c0_15 = arith.constant 0 : index
    %c0_16 = arith.constant 0 : index
    %17 = vector.load %arg7[%c0_15, %c0_16] : memref<1x1xf32, #tpu.memory_space<vmem>>, vector<1x1xf32>
    %18 = vector.broadcast %17 : vector<1x1xf32> to vector<1x256xf32>
    %19 = arith.addf %16, %18 : vector<1x256xf32>
    %c0_17 = arith.constant 0 : index
    %c0_18 = arith.constant 0 : index
    %20 = vector.load %arg8[%c0_17, %c0_18] : memref<1x256xf32, #tpu.memory_space<vmem>>, vector<1x256xf32>
    tpu.vector_store %arg8[%c0_17, %c0_18], %19 {strides = array<i32>} : memref<1x256xf32, #tpu.memory_space<vmem>>, vector<1x256xf32>,
    return
  }
  func.func @transform_0(%arg0: i32) -> (i32, i32) {
    %c0_i32 = arith.constant 0 : i32
    %c0_i32_0 = arith.constant 0 : i32
    return %c0_i32, %arg0 : i32, i32
  }
  func.func @transform_1(%arg0: i32) -> (i32, i32) {
    %c0_i32 = arith.constant 0 : i32
    %c0_i32_0 = arith.constant 0 : i32
    %c0_i32_1 = arith.constant 0 : i32
    return %c0_i32, %c0_i32_0 : i32, i32
  }
  func.func @transform_2(%arg0: i32) -> (i32, i32) {
    %c0_i32 = arith.constant 0 : i32
    %c0_i32_0 = arith.constant 0 : i32
    %c0_i32_1 = arith.constant 0 : i32
    return %c0_i32, %c0_i32_0 : i32, i32
  }
  func.func @transform_3(%arg0: i32) -> (i32, i32) {
    %c0_i32 = arith.constant 0 : i32
    %c0_i32_0 = arith.constant 0 : i32
    %c0_i32_1 = arith.constant 0 : i32
    return %c0_i32, %c0_i32_0 : i32, i32
  }
  func.func @transform_4(%arg0: i32) -> (i32, i32) {
    %c0_i32 = arith.constant 0 : i32
    %c0_i32_0 = arith.constant 0 : i32
    %c0_i32_1 = arith.constant 0 : i32
    return %c0_i32, %c0_i32_0 : i32, i32
  }
  func.func @transform_5(%arg0: i32) -> (i32, i32) {
    %c0_i32 = arith.constant 0 : i32
    %c0_i32_0 = arith.constant 0 : i32
    %c0_i32_1 = arith.constant 0 : i32
    return %c0_i32, %c0_i32_0 : i32, i32
  }
  func.func @transform_6(%arg0: i32) -> (i32, i32) {
    %c0_i32 = arith.constant 0 : i32
    %c0_i32_0 = arith.constant 0 : i32
    %c0_i32_1 = arith.constant 0 : i32
    return %c0_i32, %c0_i32_0 : i32, i32
  }
  func.func @transform_7(%arg0: i32) -> (i32, i32) {
    %c0_i32 = arith.constant 0 : i32
    %c0_i32_0 = arith.constant 0 : i32
    return %c0_i32, %arg0 : i32, i32
  }
}

</mosaic_0001>

<bundles_post_ra>
// kernel: tpu_custom_call.1
= control target key start
LH: loop header
LB: loop body
LE: loop exit
PB: predicated region body
PF: predicated region fallthrough
CT: control target
= control target key end

     0   :  { %s553_s0 = inlined_call_operand.vmem [shape: bf16[32,256], index: 0, kind: input, shape index: {}]   ;;  %s554_s1 = inlined_call_operand.vmem [shape: bf16[32,32], index: 1, kind: input, shape index: {}]   ;;  %s555_s2 = inlined_call_operand.vmem [shape: f32[32,1], index: 2, kind: input, shape index: {}]   ;;  %s556_s3 = inlined_call_operand.vmem [shape: f32[16,32], index: 3, kind: input, shape index: {}]   ;;  %s557_s4 = inlined_call_operand.vmem [shape: f32[16,1], index: 4, kind: input, shape index: {}]   ;;  %s558_s5 = inlined_call_operand.vmem [shape: f32[1,16], index: 5, kind: input, shape index: {}]   ;;  %s559_s6 = inlined_call_operand.<no memory space> [shape: f32[1,1], index: 6, kind: input, shape index: {}]   ;;  %s560_s7 = inlined_call_operand.hbm [shape: f32[1,256], index: 7, kind: output, shape index: {}]  }
   0x1   :  { %v12_v0 = vstv %s559_s6 }
   0x2   :  { %13 = vst [vmem:[#allocation2] sm:$0x1] %v12_v0 }
   0x3   :  { %v413_v1 = vld [vmem:[%s553_s0 + $0x4] ss:$8 sps:$4 sm:$0xff]   ;;  %v415_v2 = vld [vmem:[%s553_s0] ss:$8 sps:$4 sm:$0xff]   ;;  %v445_v3 = vmov 0   ;;  %v40_v7 = vld [vmem:[%s555_s2 + $0x10] sm:$0xff] }
   0x4   :  { %131 = vmatprep.mubr.bf16.mxu0 %v445_v3  ;;  %411 = vset.pattern.permute.xlu0 %v445_v3  ;;  %v416_v4 = vld [vmem:[%s553_s0 + $0x14] ss:$8 sps:$4 sm:$0xff]   ;;  %v418_v5 = vld [vmem:[%s553_s0 + $0x10] ss:$8 sps:$4 sm:$0xff]   ;;  %v38_v6 = vld [vmem:[%s555_s2] sm:$0xff]  ;;  %vm92_vm0 = vcmask 261120  }
   0x5   :  { %99 = vmatprep.subr.bf16.mxu0 %v413_v1  ;;  %412 = vset.pattern.permute.xlu1 %v445_v3  ;;  %v419_v8 = vld [vmem:[%s554_s1] sm:$0xff]   ;;  %v39_v9 = vld [vmem:[%s555_s2 + $0x8] sm:$0xff]  ;;  %v41_v10 = vld [vmem:[%s555_s2 + $0x18] sm:$0xff] }
   0x6   :  { %100 = vmatpush1.bf16.msra.mxu0 %v415_v2  ;;  %44 = vperm.xlu0 %411, %v38_v6  }
   0x7   :  { %101 = vmatprep.subr.bf16.mxu0 %v416_v4  ;;  %54 = vperm.xlu1 %412, %v40_v7  }
   0xa   :  { %102 = vmatpush1.bf16.msra.mxu0 %v418_v5 }
   0xb   :  { %14 = vsyncpa [#allocation4], 0  ;;  %49 = vperm.xlu0 %411, %v39_v9   ;;  %v162_v11 = vld [vmem:[%s557_s4] sm:$0xff]  ;;  %59 = vperm.xlu1 %412, %v41_v10   ;;  %v163_v12 = vld [vmem:[%s557_s4 + $0x8] sm:$0xff]  ;;  %v446_v15 = vmov 0.0   ;;  %vm272_vm1 = vcmask 130048  }
   0xc   :  { %v420_v13 = vld [vmem:[%s554_s1 + $0x8] sm:$0xff]   ;;  %v262_v14 = vld [vmem:[#allocation2] sm:$0x1]  ;;  %244 = vmatprep.mubr.f32.mxu1 %v446_v15  ;;  %v447_v5 = vmov 1966171168   ;;  %s448_s27 = smov [#allocation3]  }
   0xd   :  { %390 = vmatmul.mubr.msk.bf16.vlgmr.msra.gmra.mrb[0].mxu0 %vm92_vm0, %v419_v8  ;;  %v160_v48 = vld [vmem:[%s556_s3] sm:$0xff]  ;;  %v161_v49 = vld [vmem:[%s556_s3 + $0x8] sm:$0xff]  ;;  %v351_v6 = vunpack.c.l.s4 %v447_v5  ;;  %s376_s28 = sshll.u32 %s448_s27, 4  ;;  %s377_s28 = int_to_ptr.vmem [resolvable:$true] %s376_s28 }
   0xe   :  { %141 = vmatprep.mubr.bf16.mxu0 %v445_v3  ;;  %v261_v2 = vld [vmem:[%s558_s5] sm:$0x1]  ;;  %v268_v3 = vlaneseq  ;;  %s421_s5 = scalar_lea.vmem %s377_s28, 32  ;;  %p426_p1 = scmp.lt.s32.totalorder %s377_s28, %s377_s28 }
   0xf   :  { %166 = vperm.xlu0 %411, %v162_v11   ;;  %171 = vperm.xlu1 %412, %v163_v12   ;;  %v352_v9 = vunpack.c.0.s8 %v351_v6  ;;  %p422_p0 = scmp.ne.s32.totalorder %s377_s28, %s421_s5  ;;  %p427_p2 = scmp.lt.s32.totalorder %s421_s5, %s421_s5 }
  0x10   :  { %v269_v4 = vshrl.u32 %v268_v3, 7  ;;  %vm367_vm2 = vcmp.lt.s32.totalorder %v268_v3, 256 }
  0x11   :  { %p428_p3 = por %p427_p2, %p426_p1 }
  0x12   :  { %v270_v7 = vsub.s32 0, %v269_v4 }
  0x13   :  { %265 = vperm.xlu0 %411, %v262_v14   ;;  %p429_p4 = pnand %p428_p3, %p422_p0 }
  0x15   :  { %391 = vmatmul.mubr.msk.bf16.gmra.mrb[4].mxu0 %vm92_vm0, %v420_v13 }
  0x85   :  { %v45_v16 = vpop.permute.xlu0 %44 }
  0x86   :  { %v55_v25 = vpop.permute.xlu1 %54 }
  0x8a   :  { %v50_v20 = vpop.permute.xlu0 %49  ;;  %v60_v36 = vpop.permute.xlu1 %59 }
  0x8e   :  { %v167_v52 = vpop.permute.xlu0 %166  ;;  %v172_v54 = vpop.permute.xlu1 %171 }
  0x92   :  { %v266_v8 = vpop.permute.xlu0 %265 }
  0x93   :  { %v271_v10 = vrot.slane %v266_v8, %v270_v7 }
  0xe0   :  { %v133_v17 = vpop.f32.mrb[0].mxu0 }
  0xe1   :  { %v134_v18 = vadd.f32 %v133_v17, %v45_v16  ;;  %v135_v19 = vpop.f32.mrb[1].mxu0 }
  0xe2   :  { %v136_v21 = vadd.f32 %v135_v19, %v45_v16  ;;  %v137_v22 = vpop.f32.mrb[2].mxu0 }
  0xe3   :  { %v138_v23 = vadd.f32 %v137_v22, %v50_v20  ;;  %v139_v24 = vpop.f32.mrb[3].mxu0  ;;  %v152_v27 = vmax.f32 %v134_v18, 0.0 }
  0xe4   :  { %v140_v26 = vadd.f32 %v139_v24, %v50_v20  ;;  %v153_v29 = vmax.f32 %v136_v21, 0.0 }
  0xe5   :  { %v154_v28 = vmax.f32 %v138_v23, 0.0 }
  0xe6   :  { %v155_v30 = vmax.f32 %v140_v26, 0.0 }
  0xe7   :  { %v397_v31 = vpack.c.bf16 %v154_v28, %v152_v27 }
  0xe8   :  { %v143_v32 = vpop.f32.mrb[4].mxu0  ;;  %v395_v33 = vpack.c.bf16 %v155_v30, %v153_v29 }
  0xe9   :  { %v144_v34 = vadd.f32 %v143_v32, %v55_v25  ;;  %v145_v35 = vpop.f32.mrb[5].mxu0 }
  0xea   :  { %v146_v37 = vadd.f32 %v145_v35, %v55_v25  ;;  %v147_v38 = vpop.f32.mrb[6].mxu0  ;;  %396 = vmatprep.subr.bf16.mxu1 %v395_v33 }
  0xeb   :  { %v148_v39 = vadd.f32 %v147_v38, %v60_v36  ;;  %v149_v40 = vpop.f32.mrb[7].mxu0  ;;  %398 = vmatpush1.bf16.msra.mxu1 %v397_v31  ;;  %v156_v42 = vmax.f32 %v144_v34, 0.0 }
  0xec   :  { %v150_v41 = vadd.f32 %v149_v40, %v60_v36  ;;  %v157_v44 = vmax.f32 %v146_v37, 0.0 }
  0xed   :  { %v158_v43 = vmax.f32 %v148_v39, 0.0 }
  0xee   :  { %v159_v45 = vmax.f32 %v150_v41, 0.0 }
  0xef   :  { %v401_v46 = vpack.c.bf16 %v158_v43, %v156_v42 }
  0xf0   :  { %v399_v47 = vpack.c.bf16 %v159_v45, %v157_v44 }
  0xf2   :  { %400 = vmatprep.subr.bf16.mxu1 %v399_v47 }
  0xf3   :  { %402 = vmatpush1.bf16.msra.mxu1 %v401_v46 }
  0xf6   :  { %392 = vmatmul.mubr.msk.f32.vlgmr.msra.gmra.mrb[0].mxu1 %vm92_vm0, %v160_v48 }
  0xf7   :  { %250 = vmatprep.mubr.f32.mxu1 %v446_v15 }
  0xfa   :  { %393 = vmatmul.mubr.msk.f32.gmra.mrb[2].mxu1 %vm92_vm0, %v161_v49 }
  0xfb   :  { %340 = vmatprep.mubr.f32.mxu1 %v446_v15  ;;  %v355_v15 = vsub.s32 %v352_v9, %v269_v4 }
 0x1c9   :  { %v246_v50 = vpop.f32.mrb[0].mxu1 }
 0x1ca   :  { %v248_v51 = vpop.f32.mrb[1].mxu1  ;;  %v247_v53 = vadd.f32 %v246_v50, %v167_v52 }
 0x1cb   :  { %v249_v55 = vadd.f32 %v248_v51, %v167_v52 }
 0x1cc   :  { %v257_v60 = vmax.f32 %v247_v53, 0.0 }
 0x1cd   :  { %v252_v56 = vpop.f32.mrb[2].mxu1  ;;  %v258_v62 = vmax.f32 %v249_v55, 0.0 }
 0x1ce   :  { %v253_v57 = vadd.f32 %v252_v56, %v172_v54  ;;  %v254_v58 = vpop.f32.mrb[3].mxu1 }
 0x1cf   :  { %v255_v59 = vadd.f32 %v254_v58, %v172_v54 }
 0x1d0   :  { %v259_v61 = vmax.f32 %v253_v57, 0.0 }
 0x1d1   :  { %v260_v63 = vmax.f32 %v255_v59, 0.0 }
 0x1d2   :  { %v405_v0 = vpack.c.bf16 %v259_v61, %v257_v60 }
 0x1d3   :  { %v403_v1 = vpack.c.bf16 %v260_v63, %v258_v62 }
 0x1d5   :  { %404 = vmatprep.subr.bf16.mxu1 %v403_v1 }
 0x1d6   :  { %406 = vmatpush1.bf16.msra.mxu1 %v405_v0 }
 0x1d9   :  { %394 = vmatmul.mubr.msk.f32.vlgmr.msra.gmra.mrb[4].mxu1 %vm272_vm1, %v261_v2 }
 0x2ac   :  { %v342_v11 = vpop.f32.mrb[4].mxu1 }
 0x2ad   :  { %v343_v12 = vadd.f32 %v342_v11, %v271_v10  ;;  %v344_v13 = vpop.f32.mrb[5].mxu1 }
 0x2ae   :  { %v345_v14 = vadd.f32 %v344_v13, %v271_v10 }
 0x2b0   :  { %v349_v16 = vcombine.low %v343_v12, %v345_v14 }
 0x2b2   :  { %v356_v17 = vrot.slane %v349_v16, %v355_v15 }
 0x2b4   :  { %v363_v18 = vrot.slane %v356_v17, %v355_v15 }
 0x2b6   :  { %369 = vst.msk [vmem:[#allocation3] sm:$0x3] %vm367_vm2, %v363_v18 }
 0x2b7   :  { %432 = shalt.err (!%p429_p4)
}
 0x2b8   :  { %s433_s8 = scalar_lea.hbm %s560_s7, 32 }
 0x2b9   :  { %p434_p5 = scmp.ne.s32.totalorder %s560_s7, %s433_s8  ;;  %p437_p6 = scmp.lt.u32.totalorder %s433_s8, %s560_s7 }
 0x2bb   :  { %p439_p7 = pnand %p437_p6, %p434_p5 }
 0x2bd   :  { %442 = shalt.err (!%p439_p7)
}
 0x2be   :  { %379 = dma.vmem_to_hbm [thread:$0]  %s377_s28, 32, %s560_s7, [#allocation4]  }
 0x2bf   :  { %443 = dma.done.wait [#allocation4], 32  }
 0x2c0   :  { %444 = vsyncadd [#allocation4], 4294967264 }
 0x2c1   :  { %383 = vsyncpa [#allocation4], 1 }

</bundles_post_ra>
